<compile_context>
chip_gen: v7x
topology: tpu7x:2x2x1
jax: 0.10.0
libtpu: 0.0.40
codegen_flags: <defaults>
</compile_context>

<pallas_src>
import jax
import jax.numpy as jnp
from jax.experimental import pallas as pl
from jax.experimental.pallas import tpu as pltpu
import numpy as np


def _round_up(x, m):
    return ((x + m - 1) // m) * m


def _vmem_limit(*buffer_bytes):
    """Scoped-VMEM limit: 2x the estimated need (headroom), floor 32 MiB, cap 64 MiB."""
    need = int(sum(buffer_bytes))
    return int(min(max(2 * need + (4 << 20), 32 << 20), 64 << 20))


# ---------------------------------------------------------------------------
# Kernel 1: fused (both directions) input projection
#   gates_x[m, :] = x[m] @ [W_ih_fwd | W_ih_bwd] + [bias_fwd | bias_bwd]   -> bf16
# ---------------------------------------------------------------------------
def input_proj_kernel(x_ref, w_ref, b_ref, gx_ref):
    # x_ref : (TM, Ip)     bf16
    # w_ref : (Ip, 8*Hp)   bf16   (both directions side by side, single-buffered)
    # b_ref : (1,  8*Hp)   f32    (= b_ih + b_hh folded, per-gate padded)
    # gx_ref: (TM, 8*Hp)   bf16
    acc = jnp.dot(x_ref[...], w_ref[...],
                  preferred_element_type=jnp.float32) + b_ref[...]
    gx_ref[...] = acc.astype(jnp.bfloat16)


# ---------------------------------------------------------------------------
# Kernel 2: interleaved fwd/bwd masked LSTM recurrence over time blocks.
# grid = (time_block,), "arbitrary" (sequential).
# ---------------------------------------------------------------------------
def _gate_math(gates, c_prev, hp):
    # Packed gate order: i, f, o, g  (three sigmoid gates contiguous -> one EUP pass).
    sig = jax.nn.sigmoid(gates[:, :3 * hp])
    i_g = sig[:, 0 * hp:1 * hp]
    f_g = sig[:, 1 * hp:2 * hp]
    o_g = sig[:, 2 * hp:3 * hp]
    g_g = jnp.tanh(gates[:, 3 * hp:4 * hp])
    c_new = f_g * c_prev + i_g * g_g
    h_new = o_g * jnp.tanh(c_new)
    return h_new, c_new


def lstm_seq_kernel(maxlen_sref,            # scalar prefetch: (1,) int32, max(input_lens)
                    gxf_ref, gxb_ref,       # (t_blk, Bp, 4Hp) bf16  fwd / bwd x-gates
                    lens_ref,               # (Bp, 1) int32
                    whh_ref,                # (2, Hp, 4Hp) bf16
                    outf_ref, outb_ref,     # (t_blk, Bp, Hp) f32    per-step hidden
                    hn_ref, cn_ref,         # (2, Bp, Hp) f32        final states
                    hf_sc, cf_sc,           # VMEM scratch (Bp, Hp) f32  fwd state
                    hb_sc, cb_sc):          #                           bwd state
    tb = pl.program_id(0)
    n_tb = pl.num_programs(0)
    t_blk = gxf_ref.shape[0]
    hp = hf_sc.shape[-1]

    max_len = maxlen_sref[0]
    lens_v = lens_ref[...]                   # (Bp, 1) int32

    # PyTorch default h0 = c0 = 0 for both directions.
    @pl.when(tb == 0)
    def _():
        hf_sc[...] = jnp.zeros(hf_sc.shape, hf_sc.dtype)
        cf_sc[...] = jnp.zeros(cf_sc.shape, cf_sc.dtype)
        hb_sc[...] = jnp.zeros(hb_sc.shape, hb_sc.dtype)
        cb_sc[...] = jnp.zeros(cb_sc.shape, cb_sc.dtype)

    t0_f = tb * t_blk                        # forward block walks 0 .. n_tb-1
    t0_b = (n_tb - 1 - tb) * t_blk           # backward block walks n_tb-1 .. 0
    fwd_live = t0_f < max_len
    bwd_live = t0_b < max_len
    any_live = jnp.logical_or(fwd_live, bwd_live)

    # Fully padded time blocks (both directions past max_len): just emit the zero padding
    # (pad_packed_sequence pads with zeros) and skip all compute.  The gx index_maps are
    # clamped in the wrapper so no HBM refetch happens for these steps either.
    @pl.when(jnp.logical_not(any_live))
    def _():
        outf_ref[...] = jnp.zeros(outf_ref.shape, outf_ref.dtype)
        outb_ref[...] = jnp.zeros(outb_ref.shape, outb_ref.dtype)

    @pl.when(any_live)
    def _():
        w_hh_f = whh_ref[0]                  # (Hp, 4Hp) bf16
        w_hh_b = whh_ref[1]
        # Static (compile-time) in-block time indices; fwd and bwd steps interleaved in
        # one basic block so the LLO scheduler overlaps MXU / EUP / VPU across directions.
        for j in range(t_blk):
            jr = t_blk - 1 - j               # backward processes the block in reverse
            h_prev_f = hf_sc[...]
            c_prev_f = cf_sc[...]
            h_prev_b = hb_sc[...]
            c_prev_b = cb_sc[...]

            gates_f = gxf_ref[j].astype(jnp.float32) + jnp.dot(
                h_prev_f.astype(jnp.bfloat16), w_hh_f,
                preferred_element_type=jnp.float32)
            gates_b = gxb_ref[jr].astype(jnp.float32) + jnp.dot(
                h_prev_b.astype(jnp.bfloat16), w_hh_b,
                preferred_element_type=jnp.float32)

            h_new_f, c_new_f = _gate_math(gates_f, c_prev_f, hp)
            h_new_b, c_new_b = _gate_math(gates_b, c_prev_b, hp)

            # pack_padded_sequence semantics: finished (or not-yet-started, for the
            # backward direction) sequences keep their state; their per-step output is 0.
            alive_f = lens_v > (t0_f + j)    # (Bp, 1) bool
            alive_b = lens_v > (t0_b + jr)

            outf_ref[j] = jnp.where(alive_f, h_new_f, 0.0)
            outb_ref[jr] = jnp.where(alive_b, h_new_b, 0.0)
            hf_sc[...] = jnp.where(alive_f, h_new_f, h_prev_f)
            cf_sc[...] = jnp.where(alive_f, c_new_f, c_prev_f)
            hb_sc[...] = jnp.where(alive_b, h_new_b, h_prev_b)
            cb_sc[...] = jnp.where(alive_b, c_new_b, c_prev_b)

    # Final (h, c): forward = state frozen at each sequence's last valid step;
    # backward = state after consuming timestep 0.
    @pl.when(tb == n_tb - 1)
    def _():
        hn_ref[0] = hf_sc[...]
        hn_ref[1] = hb_sc[...]
        cn_ref[0] = cf_sc[...]
        cn_ref[1] = cb_sc[...]


# ---------------------------------------------------------------------------
# Kernel 3: reduce_h_W / reduce_c_W on the padded final states (concat-free:
#           new = h_fwd @ W[:, :H]^T + h_bwd @ W[:, H:]^T + b, all lane-dense).
# ---------------------------------------------------------------------------
def reduce_kernel(h_ref, c_ref, wh_ref, bh_ref, wc_ref, bc_ref, nh_ref, nc_ref):
    nh_ref[...] = (jnp.dot(h_ref[0], wh_ref[0], preferred_element_type=jnp.float32)
                   + jnp.dot(h_ref[1], wh_ref[1], preferred_element_type=jnp.float32)
                   + bh_ref[...])
    nc_ref[...] = (jnp.dot(c_ref[0], wc_ref[0], preferred_element_type=jnp.float32)
                   + jnp.dot(c_ref[1], wc_ref[1], preferred_element_type=jnp.float32)
                   + bc_ref[...])


# ---------------------------------------------------------------------------
# Host wrapper
# ---------------------------------------------------------------------------
def rnn_encoder_forward(embedded_words, input_lens, params, *, t_blk=16):
    """Pallas forward of RNNEncoder (bidirect=True).

    embedded_words: (B, T, I) float32, batch_first (as in the PyTorch module).
    input_lens:     (B,) int -- valid lengths (sorted descending, as pack_padded requires).
    Returns (output, context_mask, (h, c)):
      output:       (T, B, 2H) float32 -- per-timestep [fwd | bwd] hidden states, zero
                    past each sequence's length (pad_packed_sequence layout).
      context_mask: (B, T) int32, 1 where t < input_lens[b].
      h, c:         (B, H) float32 -- reduce_h_W / reduce_c_W of the concatenated final
                    forward/backward states.
    """
    B, T, I = embedded_words.shape
    H = params["hidden_size"]
    Hp = params["hidden_size_padded"]
    Ip = params["input_size_padded"]
    Gp = 4 * Hp

    t_blk = max(1, min(t_blk, T))
    T_pad = pl.cdiv(T, t_blk) * t_blk
    n_tb = T_pad // t_blk
    B_pad = _round_up(B, 8)

    lens = input_lens.astype(jnp.int32)
    lens_pad = jnp.zeros((B_pad,), jnp.int32).at[:B].set(lens)    # padded rows: length 0
    max_len = jnp.max(lens).reshape(1).astype(jnp.int32)          # scalar-prefetched

    # Time-major layout: the recurrence blocks time in a leading (untiled) dim and keeps
    # (B_pad, 4Hp) as the lane-dense 2-D tile.  bf16 operands for the MXU; feature dim
    # padded to a lane-aligned contraction.
    x = jnp.transpose(embedded_words, (1, 0, 2))                  # (T, B, I)
    x = jnp.pad(x, ((0, T_pad - T), (0, B_pad - B), (0, Ip - I)))
    x2d = x.reshape(T_pad * B_pad, Ip).astype(jnp.bfloat16)

    # ---- phase 1: hoisted, direction-fused input projection (one big matmul) ----
    M = T_pad * B_pad
    TM = t_blk * B_pad                                            # divides M exactly
    p1_vmem = _vmem_limit(2 * TM * Ip * 2,           # x block, double-buffered, bf16
                          Ip * 2 * Gp * 2,           # resident fused W_ih
                          2 * TM * 2 * Gp * 2)       # out block, double-buffered, bf16
    gates_x = pl.pallas_call(
        input_proj_kernel,
        out_shape=jax.ShapeDtypeStruct((M, 2 * Gp), jnp.bfloat16),
        grid_spec=pltpu.PrefetchScalarGridSpec(
            num_scalar_prefetch=0,
            grid=(M // TM,),
            in_specs=[
                pl.BlockSpec((TM, Ip), lambda m: (m, 0)),
                pl.BlockSpec((Ip, 2 * Gp), lambda m: (0, 0),
                             pipeline_mode=pl.Buffered(1)),
                pl.BlockSpec((1, 2 * Gp), lambda m: (0, 0),
                             pipeline_mode=pl.Buffered(1)),
            ],
            out_specs=pl.BlockSpec((TM, 2 * Gp), lambda m: (m, 0)),
        ),
        compiler_params=pltpu.CompilerParams(
            dimension_semantics=("parallel",),
            vmem_limit_bytes=p1_vmem),
    )(x2d, params["w_ih"], params["bias"])
    gates_x = gates_x.reshape(T_pad, B_pad, 2 * Gp)               # free reshape

    # ---- phase 2: interleaved fwd/bwd masked recurrence over time blocks ----
    lens_2d = lens_pad.reshape(B_pad, 1)

    def _n_valid_blocks(ml_ref):
        return jnp.maximum((ml_ref[0] + t_blk - 1) // t_blk, 1)

    # gx index_maps clamp the time-block index past max_len: Pallas then sees a repeated
    # block index and skips the HBM refetch for the padded tail.  (Output blocks are NOT
    # clamped: they must still be written with zeros for pad_packed semantics.)
    def gx_fwd_map(tb, ml_ref):
        nv = _n_valid_blocks(ml_ref)
        return (jnp.minimum(tb, nv - 1), 0, 0)                    # cols [0, 4Hp)

    def gx_bwd_map(tb, ml_ref):
        nv = _n_valid_blocks(ml_ref)
        return (jnp.minimum(n_tb - 1 - tb, nv - 1), 0, 1)         # cols [4Hp, 8Hp)

    p2_vmem = _vmem_limit(2 * 2 * t_blk * B_pad * Gp * 2,   # fwd+bwd gx, 2-buf, bf16
                          2 * 2 * t_blk * B_pad * Hp * 4,   # fwd+bwd out, 2-buf, f32
                          2 * Hp * Gp * 2,                  # resident W_hh
                          4 * B_pad * Hp * 4,               # h/c scratch (both dirs)
                          4 * B_pad * Hp * 4)               # resident hn/cn outputs

    out_f, out_b, h_n, c_n = pl.pallas_call(
        lstm_seq_kernel,
        out_shape=(
            jax.ShapeDtypeStruct((T_pad, B_pad, Hp), jnp.float32),
            jax.ShapeDtypeStruct((T_pad, B_pad, Hp), jnp.float32),
            jax.ShapeDtypeStruct((2, B_pad, Hp), jnp.float32),
            jax.ShapeDtypeStruct((2, B_pad, Hp), jnp.float32),
        ),
        grid_spec=pltpu.PrefetchScalarGridSpec(
            num_scalar_prefetch=1,
            grid=(n_tb,),
            in_specs=[
                pl.BlockSpec((t_blk, B_pad, Gp), gx_fwd_map),
                pl.BlockSpec((t_blk, B_pad, Gp), gx_bwd_map),
                pl.BlockSpec((B_pad, 1), lambda tb, ml: (0, 0),
                             pipeline_mode=pl.Buffered(1)),
                pl.BlockSpec((2, Hp, Gp), lambda tb, ml: (0, 0, 0),
                             pipeline_mode=pl.Buffered(1)),
            ],
            out_specs=[
                pl.BlockSpec((t_blk, B_pad, Hp), lambda tb, ml: (tb, 0, 0)),
                pl.BlockSpec((t_blk, B_pad, Hp), lambda tb, ml: (n_tb - 1 - tb, 0, 0)),
                pl.BlockSpec((2, B_pad, Hp), lambda tb, ml: (0, 0, 0)),
                pl.BlockSpec((2, B_pad, Hp), lambda tb, ml: (0, 0, 0)),
            ],
            scratch_shapes=[pltpu.VMEM((B_pad, Hp), jnp.float32)] * 4,
        ),
        compiler_params=pltpu.CompilerParams(
            dimension_semantics=("arbitrary",),
            vmem_limit_bytes=p2_vmem),
    )(max_len, gates_x, gates_x, lens_2d, params["w_hh"])

    # TODO(synk): pad_packed_sequence truncates output/context_mask to input_lens[0]; that
    # data-dependent shape has no JAX equivalent, so we return full-T arrays (zero-padded).
    output = jnp.concatenate([out_f[:T, :B, :H], out_b[:T, :B, :H]], axis=-1)  # (T, B, 2H)

    # ---- phase 3: reduce_h_W / reduce_c_W on the padded final states (concat-free) ----
    new_h_p, new_c_p = pl.pallas_call(
        reduce_kernel,
        out_shape=(jax.ShapeDtypeStruct((B_pad, Hp), jnp.float32),
                   jax.ShapeDtypeStruct((B_pad, Hp), jnp.float32)),
    )(h_n, c_n,
      params["w_reduce_h"], params["b_reduce_h"],
      params["w_reduce_c"], params["b_reduce_c"])
    new_h = new_h_p[:B, :H]
    new_c = new_c_p[:B, :H]

    context_mask = (jnp.arange(T, dtype=jnp.int32)[None, :]
                    < lens[:, None]).astype(jnp.int32)            # (B, T)

    return output, context_mask, (new_h, new_c)


# ---------------------------------------------------------------------------
# Parameter init: matches RNNEncoder.init_weight() (xavier LSTM weights, zero LSTM
# biases, default nn.Linear init for the reduce layers), pre-packed for the kernels.
# ---------------------------------------------------------------------------
def init_params(key, input_size, hidden_size):
    I, H = input_size, hidden_size
    Ip = _round_up(I, 128)
    Hp = _round_up(H, 128)
    ks = jax.random.split(key, 8)

    def xavier(k, shape):                    # PyTorch (fan_out, fan_in) convention
        bound = np.sqrt(6.0 / (shape[0] + shape[1]))
        return jax.random.uniform(k, shape, jnp.float32, -bound, bound)

    # PyTorch layout: weight_ih_l0{,_reverse} (4H, I), weight_hh_l0{,_reverse} (4H, H);
    # PyTorch gate order i, f, g, o; all LSTM biases are zero-initialised by init_weight().
    w_ih = [xavier(ks[0], (4 * H, I)), xavier(ks[1], (4 * H, I))]
    w_hh = [xavier(ks[2], (4 * H, H)), xavier(ks[3], (4 * H, H))]

    GATE_PERM = (0, 1, 3, 2)   # i, f, g, o  ->  i, f, o, g (sigmoid gates contiguous)

    def pack(w, rows_to):                    # (4H, rows_in) -> (rows_to, 4*Hp)
        rows_in = w.shape[1]
        w4 = jnp.transpose(w).reshape(rows_in, 4, H)
        w4 = w4[:, GATE_PERM, :]
        w4 = jnp.pad(w4, ((0, rows_to - rows_in), (0, 0), (0, Hp - H)))
        return w4.reshape(rows_to, 4 * Hp)

    w_ih_k = jnp.concatenate([pack(w, Ip) for w in w_ih], axis=1).astype(jnp.bfloat16)
    w_hh_k = jnp.stack([pack(w, Hp) for w in w_hh]).astype(jnp.bfloat16)
    bias_k = jnp.zeros((1, 2 * 4 * Hp), jnp.float32)   # b_ih + b_hh folded (zeros here)

    rb = 1.0 / np.sqrt(2 * H)                # nn.Linear(2H, H) default bound
    w_rh = jax.random.uniform(ks[4], (H, 2 * H), jnp.float32, -rb, rb)
    b_rh = jax.random.uniform(ks[5], (H,), jnp.float32, -rb, rb)
    w_rc = jax.random.uniform(ks[6], (H, 2 * H), jnp.float32, -rb, rb)
    b_rc = jax.random.uniform(ks[7], (H,), jnp.float32, -rb, rb)

    def pack_reduce(w):                      # (H, 2H) -> (2, Hp, Hp): fwd / bwd halves
        w_f = jnp.pad(jnp.transpose(w[:, :H]), ((0, Hp - H), (0, Hp - H)))
        w_b = jnp.pad(jnp.transpose(w[:, H:]), ((0, Hp - H), (0, Hp - H)))
        return jnp.stack([w_f, w_b])

    return dict(
        hidden_size=H,
        hidden_size_padded=Hp,
        input_size_padded=Ip,
        w_ih=w_ih_k,                         # (Ip, 8Hp) bf16  [fwd | bwd]
        w_hh=w_hh_k,                         # (2, Hp, 4Hp) bf16
        bias=bias_k,                         # (1, 8Hp) f32
        w_reduce_h=pack_reduce(w_rh),
        b_reduce_h=jnp.pad(b_rh, (0, Hp - H)).reshape(1, Hp),
        w_reduce_c=pack_reduce(w_rc),
        b_reduce_c=jnp.pad(b_rc, (0, Hp - H)).reshape(1, Hp),
    )


if __name__ == "__main__":
    # Small shapes consistent with the module's forward (bidirect=True).
    B, T, I, H = 2, 8, 16, 32

    key = jax.random.PRNGKey(0)
    kx, kp = jax.random.split(key)

    embedded_words = jax.random.normal(kx, (B, T, I), jnp.float32)
    input_lens = jnp.array([8, 5], jnp.int32)   # sorted descending (pack_padded_sequence)
    params = init_params(kp, I, H)

    output, context_mask, (h_t, c_t) = rnn_encoder_forward(
        embedded_words, input_lens, params)
    jax.block_until_ready((output, context_mask, h_t, c_t))

    assert output.shape == (T, B, 2 * H)
    assert context_mask.shape == (B, T)
    assert h_t.shape == (B, H) and c_t.shape == (B, H)
    # pad_packed_sequence semantics: positions past each sequence's length are exact zeros.
    assert float(jnp.abs(output[int(input_lens[1]):, 1, :]).max()) == 0.0
    assert bool(jnp.all(jnp.isfinite(output))) and bool(jnp.all(jnp.isfinite(h_t)))
    print("KERNEL_OK")
</pallas_src>

<mosaic_0001>
module attributes {stable_mosaic.version = 11 : i64} {
  func.func @input_proj_kernel(%arg0: i32, %arg1: memref<64x128xbf16, #tpu.memory_space<vmem>>, %arg2: memref<128x1024xbf16, #tpu.memory_space<vmem>>, %arg3: memref<1x1024xf32, #tpu.memory_space<vmem>>, %arg4: memref<64x1024xbf16, #tpu.memory_space<vmem>>) attributes {dimension_semantics = [#tpu.dimension_semantics<parallel>], iteration_bounds = array<i64: 1>, scalar_prefetch = 0 : i64, scratch_operands = 0 : i64, tpu.core_type = #tpu.core_type<tc>, window_params = [{transform_indices = @transform_0, window_bounds = array<i64: 64, 128>}, {pipeline_mode = #tpu.pipeline_mode<synchronous>, transform_indices = @transform_1, window_bounds = array<i64: 128, 1024>}, {pipeline_mode = #tpu.pipeline_mode<synchronous>, transform_indices = @transform_2, window_bounds = array<i64: 1, 1024>}, {transform_indices = @transform_3, window_bounds = array<i64: 64, 1024>}]} {
    %c0 = arith.constant 0 : index
    %c0_0 = arith.constant 0 : index
    %0 = vector.load %arg1[%c0, %c0_0] : memref<64x128xbf16, #tpu.memory_space<vmem>>, vector<64x128xbf16>
    %c0_1 = arith.constant 0 : index
    %c0_2 = arith.constant 0 : index
    %1 = vector.load %arg2[%c0_1, %c0_2] : memref<128x1024xbf16, #tpu.memory_space<vmem>>, vector<128x1024xbf16>
    %cst = arith.constant dense<0.000000e+00> : vector<64x1024xf32>
    %2 = tpu.matmul %0, %1, %cst {dimension_numbers = #tpu.dot_dimension_numbers<[1], [0], [0], [1], [0, 0, 1, 1], [], []>} : vector<64x128xbf16>, vector<128x1024xbf16>, vector<64x1024xf32> -> vector<64x1024xf32>
    %c0_3 = arith.constant 0 : index
    %c0_4 = arith.constant 0 : index
    %3 = vector.load %arg3[%c0_3, %c0_4] : memref<1x1024xf32, #tpu.memory_space<vmem>>, vector<1x1024xf32>
    %4 = vector.broadcast %3 : vector<1x1024xf32> to vector<64x1024xf32>
    %5 = arith.addf %2, %4 : vector<64x1024xf32>
    %6 = arith.truncf %5 : vector<64x1024xf32> to vector<64x1024xbf16>
    %c0_5 = arith.constant 0 : index
    %c0_6 = arith.constant 0 : index
    %7 = vector.load %arg4[%c0_5, %c0_6] : memref<64x1024xbf16, #tpu.memory_space<vmem>>, vector<64x1024xbf16>
    tpu.vector_store %arg4[%c0_5, %c0_6], %6 {strides = array<i32>} : memref<64x1024xbf16, #tpu.memory_space<vmem>>, vector<64x1024xbf16>,
    return
  }
  func.func @transform_0(%arg0: i32) -> (i32, i32) {
    %c0_i32 = arith.constant 0 : i32
    %c0_i32_0 = arith.constant 0 : i32
    return %arg0, %c0_i32 : i32, i32
  }
  func.func @transform_1(%arg0: i32) -> (i32, i32) {
    %c0_i32 = arith.constant 0 : i32
    %c0_i32_0 = arith.constant 0 : i32
    %c0_i32_1 = arith.constant 0 : i32
    return %c0_i32, %c0_i32_0 : i32, i32
  }
  func.func @transform_2(%arg0: i32) -> (i32, i32) {
    %c0_i32 = arith.constant 0 : i32
    %c0_i32_0 = arith.constant 0 : i32
    %c0_i32_1 = arith.constant 0 : i32
    return %c0_i32, %c0_i32_0 : i32, i32
  }
  func.func @transform_3(%arg0: i32) -> (i32, i32) {
    %c0_i32 = arith.constant 0 : i32
    %c0_i32_0 = arith.constant 0 : i32
    return %arg0, %c0_i32 : i32, i32
  }
}

</mosaic_0001>

<bundles_post_ra>
// kernel: tpu_custom_call.1
= control target key start
LH: loop header
LB: loop body
LE: loop exit
PB: predicated region body
PF: predicated region fallthrough
CT: control target
= control target key end

     0   :  { %8 = vsyncpa [#allocation3], 0  ;;  %s1497_s0 = inlined_call_operand.hbm [shape: bf16[64,128], index: 0, kind: input, shape index: {}]   ;;  %s1498_s1 = inlined_call_operand.hbm [shape: bf16[128,1024], index: 1, kind: input, shape index: {}]   ;;  %s1499_s2 = inlined_call_operand.hbm [shape: f32[1,1024], index: 2, kind: input, shape index: {}]   ;;  %s1500_s3 = inlined_call_operand.hbm [shape: bf16[64,1024], index: 3, kind: output, shape index: {}]  }
   0x1   :  { %9 = vsyncpa [#allocation6], 0 }
   0x2   :  { %10 = vsyncpa [#allocation4], 0  ;;  %s1286_s12 = smov [#allocation5]   ;;  %s1192_s16 = scalar_lea.hbm %s1498_s1, 8192 }
   0x3   :  { %s28_s13 = sshll.u32 %s1286_s12, 4  ;;  %p1193_p0 = scmp.ne.s32.totalorder %s1498_s1, %s1192_s16  ;;  %s29_s13 = int_to_ptr.vmem [resolvable:$true] %s28_s13 }
   0x4   :  { %p1196_p1 = scmp.lt.u32.totalorder %s1192_s16, %s1498_s1 }
   0x6   :  { %p1198_p2 = pnand %p1196_p1, %p1193_p0 }
   0x8   :  { %1201 = shalt.err (!%p1198_p2)
}
   0x9   :  { %s1202_s21 = scalar_lea.vmem %s29_s13, 8192  ;;  %p1207_p4 = scmp.lt.s32.totalorder %s29_s13, %s29_s13 }
   0xa   :  { %p1203_p3 = scmp.ne.s32.totalorder %s29_s13, %s1202_s21  ;;  %p1208_p5 = scmp.lt.s32.totalorder %s1202_s21, %s1202_s21 }
   0xc   :  { %p1209_p6 = por %p1208_p5, %p1207_p4 }
   0xe   :  { %p1210_p7 = pnand %p1209_p6, %p1203_p3 }
  0x10   :  { %1213 = shalt.err (!%p1210_p7)
}
  0x11   :  { %s1287_s22 = smov 512   ;;  %s1288_s23 = smov 32  }
  0x12   :  { %34 = dma.hbm_to_vmem [thread:$0]  %s1498_s1, 8192, %s29_s13, [#allocation6], %s1287_s22, %s1287_s22, %s1288_s23  }
  0x13   :  { %s1289_s26 = smov [#allocation2]   ;;  %s1214_s30 = scalar_lea.hbm %s1497_s0, 512 }
  0x14   :  { %s16_s27 = sshll.u32 %s1289_s26, 4  ;;  %p1215_p8 = scmp.ne.s32.totalorder %s1497_s0, %s1214_s30  ;;  %s17_s27 = int_to_ptr.vmem [resolvable:$true] %s16_s27 }
  0x15   :  { %p1218_p9 = scmp.lt.u32.totalorder %s1214_s30, %s1497_s0 }
  0x17   :  { %p1220_p10 = pnand %p1218_p9, %p1215_p8 }
  0x19   :  { %1223 = shalt.err (!%p1220_p10)
}
  0x1a   :  { %s1224_s8 = scalar_lea.vmem %s17_s27, 512  ;;  %p1229_p12 = scmp.lt.s32.totalorder %s17_s27, %s17_s27 }
  0x1b   :  { %p1225_p11 = scmp.ne.s32.totalorder %s17_s27, %s1224_s8  ;;  %p1230_p13 = scmp.lt.s32.totalorder %s1224_s8, %s1224_s8 }
  0x1d   :  { %p1231_p0 = por %p1230_p13, %p1229_p12 }
  0x1f   :  { %p1232_p1 = pnand %p1231_p0, %p1225_p11 }
  0x21   :  { %1235 = shalt.err (!%p1232_p1)
}
  0x22   :  { %s1290_s1 = smov 64   ;;  %s1291_s9 = smov 4  }
  0x23   :  { %22 = dma.hbm_to_vmem [thread:$0]  %s1497_s0, 512, %s17_s27, [#allocation3], %s1290_s1, %s1290_s1, %s1291_s9  }
  0x24   :  { %s1292_s12 = smov [#allocation7]   ;;  %s1236_s16 = scalar_lea.hbm %s1499_s2, 128 }
  0x25   :  { %s41_s13 = sshll.u32 %s1292_s12, 4  ;;  %p1237_p2 = scmp.ne.s32.totalorder %s1499_s2, %s1236_s16  ;;  %s42_s13 = int_to_ptr.vmem [resolvable:$true] %s41_s13 }
  0x26   :  { %p1240_p3 = scmp.lt.u32.totalorder %s1236_s16, %s1499_s2 }
  0x28   :  { %p1242_p4 = pnand %p1240_p3, %p1237_p2 }
  0x2a   :  { %1245 = shalt.err (!%p1242_p4)
}
  0x2b   :  { %s1246_s21 = scalar_lea.vmem %s42_s13, 128  ;;  %p1251_p6 = scmp.lt.s32.totalorder %s42_s13, %s42_s13 }
  0x2c   :  { %p1247_p5 = scmp.ne.s32.totalorder %s42_s13, %s1246_s21  ;;  %p1252_p7 = scmp.lt.s32.totalorder %s1246_s21, %s1246_s21 }
  0x2e   :  { %p1253_p8 = por %p1252_p7, %p1251_p6 }
  0x30   :  { %p1254_p9 = pnand %p1253_p8, %p1247_p5 }
  0x32   :  { %1257 = shalt.err (!%p1254_p9)
}
  0x33   :  { %44 = dma.hbm_to_vmem [thread:$0]  %s1499_s2, 128, %s42_s13, [#allocation6]  }
  0x34   :  { %1280 = dma.done.wait [#allocation3], 512  }
  0x35   :  { %1281 = vsyncadd [#allocation3], 4294966784 }
  0x36   :  { %1282 = dma.done.wait [#allocation6], 8320  }
  0x37   :  { %1283 = vsyncadd [#allocation6], 4294958976  ;;  %v1293_v0 = vmov 0   ;;  %v63_v1 = vld [vmem:[#allocation5] sm:$0xff]  ;;  %v64_v3 = vld [vmem:[#allocation5 + $0x8] sm:$0xff]  ;;  %s1294_s2 = smov [#allocation8]  }
  0x38   :  { %545 = vmatprep.mubr.bf16.mxu0 %v1293_v0  ;;  %618 = vmatprep.mubr.bf16.mxu1 %v1293_v0  ;;  %v67_v2 = vld [vmem:[#allocation5 + $0x20] sm:$0xff]  ;;  %v68_v5 = vld [vmem:[#allocation5 + $0x28] sm:$0xff]  ;;  %v65_v63 = vld [vmem:[#allocation5 + $0x10] sm:$0xff]  ;;  %s1034_s25 = sshll.u32 %s1294_s2, 4  ;;  %s1035_s25 = int_to_ptr.vmem [resolvable:$true] %s1034_s25 }
  0x39   :  { %v1052_v4 = vcombine.high %v63_v1, %v67_v2  ;;  %v1051_v6 = vcombine.low %v63_v1, %v67_v2  ;;  %v71_v7 = vld [vmem:[#allocation5 + $0x40] sm:$0xff]  ;;  %v1054_v9 = vcombine.high %v64_v3, %v68_v5  ;;  %v1053_v10 = vcombine.low %v64_v3, %v68_v5  ;;  %v72_v12 = vld [vmem:[#allocation5 + $0x48] sm:$0xff]  ;;  %v69_v1 = vld [vmem:[#allocation5 + $0x30] sm:$0xff]  ;;  %s1258_s26 = scalar_lea.vmem %s1035_s25, 4096  ;;  %p1263_p11 = scmp.lt.s32.totalorder %s1035_s25, %s1035_s25 }
  0x3a   :  { %v75_v8 = vld [vmem:[#allocation5 + $0x60] sm:$0xff]  ;;  %v76_v13 = vld [vmem:[#allocation5 + $0x68] sm:$0xff]  ;;  %v66_v2 = vld [vmem:[#allocation5 + $0x18] sm:$0xff]  ;;  %p1259_p10 = scmp.ne.s32.totalorder %s1035_s25, %s1258_s26  ;;  %p1264_p12 = scmp.lt.s32.totalorder %s1258_s26, %s1258_s26 }
  0x3b   :  { %v1060_v11 = vcombine.high %v71_v7, %v75_v8  ;;  %v79_v14 = vld [vmem:[#allocation5 + $0x80] sm:$0xff]  ;;  %513 = vmatprep.subr.bf16.mxu0 %v1052_v4  ;;  %v1062_v15 = vcombine.high %v72_v12, %v76_v13  ;;  %v80_v17 = vld [vmem:[#allocation5 + $0x88] sm:$0xff]  ;;  %586 = vmatprep.subr.bf16.mxu1 %v1054_v9  ;;  %v1059_v19 = vcombine.low %v71_v7, %v75_v8  ;;  %v70_v3 = vld [vmem:[#allocation5 + $0x38] sm:$0xff] }
  0x3c   :  { %v83_v16 = vld [vmem:[#allocation5 + $0xa0] sm:$0xff]  ;;  %v84_v18 = vld [vmem:[#allocation5 + $0xa8] sm:$0xff]  ;;  %514 = vmatpush1.bf16.msra.mxu0 %v1051_v6  ;;  %587 = vmatpush1.bf16.msra.mxu1 %v1053_v10  ;;  %v1061_v20 = vcombine.low %v72_v12, %v76_v13  ;;  %v1056_v6 = vcombine.high %v65_v63, %v69_v1  ;;  %v1058_v7 = vcombine.high %v66_v2, %v70_v3  ;;  %v73_v8 = vld [vmem:[#allocation5 + $0x50] sm:$0xff]  ;;  %p1265_p13 = por %p1264_p12, %p1263_p11 }
  0x3d   :  { %515 = vmatprep.subr.bf16.mxu0 %v1060_v11  ;;  %v1068_v21 = vcombine.high %v79_v14, %v83_v16  ;;  %588 = vmatprep.subr.bf16.mxu1 %v1062_v15  ;;  %v1070_v22 = vcombine.high %v80_v17, %v84_v18  ;;  %v87_v23 = vld [vmem:[#allocation5 + $0xc0] sm:$0xff]  ;;  %v88_v25 = vld [vmem:[#allocation5 + $0xc8] sm:$0xff]  ;;  %v1067_v27 = vcombine.low %v79_v14, %v83_v16  ;;  %v77_v9 = vld [vmem:[#allocation5 + $0x70] sm:$0xff] }
  0x3e   :  { %v91_v24 = vld [vmem:[#allocation5 + $0xe0] sm:$0xff]  ;;  %v92_v26 = vld [vmem:[#allocation5 + $0xe8] sm:$0xff]  ;;  %v1069_v28 = vcombine.low %v80_v17, %v84_v18  ;;  %v74_v11 = vld [vmem:[#allocation5 + $0x58] sm:$0xff]  ;;  %v1055_v13 = vcombine.low %v65_v63, %v69_v1  ;;  %v1057_v14 = vcombine.low %v66_v2, %v70_v3  ;;  %v1064_v15 = vcombine.high %v73_v8, %v77_v9  ;;  %p1266_p0 = pnand %p1265_p13, %p1259_p10 }
  0x3f   :  { %v1076_v29 = vcombine.high %v87_v23, %v91_v24  ;;  %v1078_v30 = vcombine.high %v88_v25, %v92_v26  ;;  %v95_v31 = vld [vmem:[#allocation5 + $0x100] sm:$0xff]  ;;  %v96_v33 = vld [vmem:[#allocation5 + $0x108] sm:$0xff]  ;;  %v1075_v35 = vcombine.low %v87_v23, %v91_v24  ;;  %v1077_v36 = vcombine.low %v88_v25, %v92_v26  ;;  %v78_v12 = vld [vmem:[#allocation5 + $0x78] sm:$0xff] }
  0x40   :  { %516 = vmatpush1.bf16.msra.mxu0 %v1059_v19  ;;  %589 = vmatpush1.bf16.msra.mxu1 %v1061_v20  ;;  %v99_v32 = vld [vmem:[#allocation5 + $0x120] sm:$0xff]  ;;  %v100_v34 = vld [vmem:[#allocation5 + $0x128] sm:$0xff]  ;;  %v1066_v16 = vcombine.high %v74_v11, %v78_v12  ;;  %v81_v17 = vld [vmem:[#allocation5 + $0x90] sm:$0xff] }
  0x41   :  { %517 = vmatprep.subr.bf16.mxu0 %v1068_v21  ;;  %590 = vmatprep.subr.bf16.mxu1 %v1070_v22  ;;  %v1084_v37 = vcombine.high %v95_v31, %v99_v32  ;;  %v103_v38 = vld [vmem:[#allocation5 + $0x140] sm:$0xff]  ;;  %v1086_v39 = vcombine.high %v96_v33, %v100_v34  ;;  %v104_v41 = vld [vmem:[#allocation5 + $0x148] sm:$0xff]  ;;  %v1083_v43 = vcombine.low %v95_v31, %v99_v32  ;;  %v85_v18 = vld [vmem:[#allocation5 + $0xb0] sm:$0xff] }
  0x42   :  { %v107_v40 = vld [vmem:[#allocation5 + $0x160] sm:$0xff]  ;;  %v108_v42 = vld [vmem:[#allocation5 + $0x168] sm:$0xff]  ;;  %v1085_v44 = vcombine.low %v96_v33, %v100_v34  ;;  %v82_v19 = vld [vmem:[#allocation5 + $0x98] sm:$0xff]  ;;  %v1063_v21 = vcombine.low %v73_v8, %v77_v9  ;;  %v1065_v22 = vcombine.low %v74_v11, %v78_v12  ;;  %v1072_v23 = vcombine.high %v81_v17, %v85_v18 }
  0x43   :  { %v1092_v45 = vcombine.high %v103_v38, %v107_v40  ;;  %v111_v46 = vld [vmem:[#allocation5 + $0x180] sm:$0xff]  ;;  %v1094_v47 = vcombine.high %v104_v41, %v108_v42  ;;  %v112_v49 = vld [vmem:[#allocation5 + $0x188] sm:$0xff]  ;;  %v1091_v51 = vcombine.low %v103_v38, %v107_v40  ;;  %v1093_v52 = vcombine.low %v104_v41, %v108_v42  ;;  %v86_v20 = vld [vmem:[#allocation5 + $0xb8] sm:$0xff] }
  0x44   :  { %518 = vmatpush1.bf16.msra.mxu0 %v1067_v27  ;;  %591 = vmatpush1.bf16.msra.mxu1 %v1069_v28  ;;  %v115_v48 = vld [vmem:[#allocation5 + $0x1a0] sm:$0xff]  ;;  %v116_v50 = vld [vmem:[#allocation5 + $0x1a8] sm:$0xff]  ;;  %v1074_v24 = vcombine.high %v82_v19, %v86_v20  ;;  %v89_v25 = vld [vmem:[#allocation5 + $0xd0] sm:$0xff]  ;;  %v1073_v31 = vcombine.low %v82_v19, %v86_v20 }
  0x45   :  { %519 = vmatprep.subr.bf16.mxu0 %v1076_v29  ;;  %592 = vmatprep.subr.bf16.mxu1 %v1078_v30  ;;  %v1100_v53 = vcombine.high %v111_v46, %v115_v48  ;;  %v1102_v54 = vcombine.high %v112_v49, %v116_v50  ;;  %v119_v55 = vld [vmem:[#allocation5 + $0x1c0] sm:$0xff]  ;;  %v120_v57 = vld [vmem:[#allocation5 + $0x1c8] sm:$0xff]  ;;  %v1099_v59 = vcombine.low %v111_v46, %v115_v48  ;;  %v93_v26 = vld [vmem:[#allocation5 + $0xf0] sm:$0xff] }
  0x46   :  { %v123_v56 = vld [vmem:[#allocation5 + $0x1e0] sm:$0xff]  ;;  %v124_v58 = vld [vmem:[#allocation5 + $0x1e8] sm:$0xff]  ;;  %v1101_v60 = vcombine.low %v112_v49, %v116_v50  ;;  %v90_v28 = vld [vmem:[#allocation5 + $0xd8] sm:$0xff]  ;;  %v1071_v30 = vcombine.low %v81_v17, %v85_v18  ;;  %v1080_v32 = vcombine.high %v89_v25, %v93_v26  ;;  %v1079_v38 = vcombine.low %v89_v25, %v93_v26 }
  0x47   :  { %v1108_v61 = vcombine.high %v119_v55, %v123_v56  ;;  %v1110_v62 = vcombine.high %v120_v57, %v124_v58  ;;  %v1107_v4 = vcombine.low %v119_v55, %v123_v56  ;;  %v1109_v5 = vcombine.low %v120_v57, %v124_v58  ;;  %v1356_v10 = vld [vmem:[#allocation2] sm:$0xff]   ;;  %v1362_v27 = vld [vmem:[#allocation2 + $0x8] sm:$0xff]   ;;  %v94_v29 = vld [vmem:[#allocation5 + $0xf8] sm:$0xff] }
  0x48   :  { %520 = vmatpush1.bf16.msra.mxu0 %v1075_v35  ;;  %593 = vmatpush1.bf16.msra.mxu1 %v1077_v36  ;;  %v1082_v33 = vcombine.high %v90_v28, %v94_v29  ;;  %v97_v34 = vld [vmem:[#allocation5 + $0x110] sm:$0xff]  ;;  %v98_v36 = vld [vmem:[#allocation5 + $0x118] sm:$0xff] }
  0x49   :  { %521 = vmatprep.subr.bf16.mxu0 %v1084_v37  ;;  %594 = vmatprep.subr.bf16.mxu1 %v1086_v39  ;;  %v101_v35 = vld [vmem:[#allocation5 + $0x130] sm:$0xff]  ;;  %v102_v37 = vld [vmem:[#allocation5 + $0x138] sm:$0xff]  ;;  %v1081_v39 = vcombine.low %v90_v28, %v94_v29 }
  0x4a   :  { %v1088_v40 = vcombine.high %v97_v34, %v101_v35  ;;  %v1090_v41 = vcombine.high %v98_v36, %v102_v37  ;;  %v105_v42 = vld [vmem:[#allocation5 + $0x150] sm:$0xff]  ;;  %v110_v46 = vld [vmem:[#allocation5 + $0x178] sm:$0xff]  ;;  %v1089_v48 = vcombine.low %v98_v36, %v102_v37 }
  0x4b   :  { %v126_v63 = vld [vmem:[#allocation5 + $0x1f8] sm:$0xff] }
  0x4c   :  { %522 = vmatpush1.bf16.msra.mxu0 %v1083_v43  ;;  %595 = vmatpush1.bf16.msra.mxu1 %v1085_v44  ;;  %v109_v43 = vld [vmem:[#allocation5 + $0x170] sm:$0xff] }
  0x4d   :  { %523 = vmatprep.subr.bf16.mxu0 %v1092_v45  ;;  %596 = vmatprep.subr.bf16.mxu1 %v1094_v47  ;;  %v1190_v44 = vld [vmem:[#allocation2 + $0x10] sm:$0xff]   ;;  %v106_v45 = vld [vmem:[#allocation5 + $0x158] sm:$0xff]  ;;  %v1087_v47 = vcombine.low %v97_v34, %v101_v35  ;;  %v1096_v49 = vcombine.high %v105_v42, %v109_v43  ;;  %v1095_v55 = vcombine.low %v105_v42, %v109_v43 }
  0x4e   :  { %v1098_v50 = vcombine.high %v106_v45, %v110_v46  ;;  %v1097_v56 = vcombine.low %v106_v45, %v110_v46 }
  0x50   :  { %524 = vmatpush1.bf16.msra.mxu0 %v1091_v51  ;;  %597 = vmatpush1.bf16.msra.mxu1 %v1093_v52  ;;  %v113_v51 = vld [vmem:[#allocation5 + $0x190] sm:$0xff] }
  0x51   :  { %525 = vmatprep.subr.bf16.mxu0 %v1100_v53  ;;  %598 = vmatprep.subr.bf16.mxu1 %v1102_v54  ;;  %v117_v52 = vld [vmem:[#allocation5 + $0x1b0] sm:$0xff]  ;;  %v114_v53 = vld [vmem:[#allocation5 + $0x198] sm:$0xff] }
  0x52   :  { %v118_v54 = vld [vmem:[#allocation5 + $0x1b8] sm:$0xff]  ;;  %v1104_v57 = vcombine.high %v113_v51, %v117_v52  ;;  %v1103_v1 = vcombine.low %v113_v51, %v117_v52 }
  0x53   :  { %v1106_v58 = vcombine.high %v114_v53, %v118_v54  ;;  %v1105_v2 = vcombine.low %v114_v53, %v118_v54 }
  0x54   :  { %526 = vmatpush1.bf16.msra.mxu0 %v1099_v59  ;;  %599 = vmatpush1.bf16.msra.mxu1 %v1101_v60  ;;  %v121_v59 = vld [vmem:[#allocation5 + $0x1d0] sm:$0xff] }
  0x55   :  { %527 = vmatprep.subr.bf16.mxu0 %v1108_v61  ;;  %600 = vmatprep.subr.bf16.mxu1 %v1110_v62  ;;  %v125_v60 = vld [vmem:[#allocation5 + $0x1f0] sm:$0xff]  ;;  %v1191_v61 = vld [vmem:[#allocation2 + $0x18] sm:$0xff]  }
  0x56   :  { %v122_v62 = vld [vmem:[#allocation5 + $0x1d8] sm:$0xff]  ;;  %v1112_v3 = vcombine.high %v121_v59, %v125_v60 }
  0x58   :  { %528 = vmatpush1.bf16.msra.mxu0 %v1107_v4  ;;  %601 = vmatpush1.bf16.msra.mxu1 %v1109_v5  ;;  %v1114_v4 = vcombine.high %v122_v62, %v126_v63  ;;  %v1111_v5 = vcombine.low %v121_v59, %v125_v60 }
  0x59   :  { %659 = vmatprep.subr.bf16.mxu0 %v1056_v6  ;;  %732 = vmatprep.subr.bf16.mxu1 %v1058_v7  ;;  %v1113_v6 = vcombine.low %v122_v62, %v126_v63  ;;  %v129_v7 = vlaneseq }
  0x5b   :  { %546 = vmatmul.mubr.bf16.vlgmr.msra.gmra.mrb[0].mxu0 %v1356_v10  ;;  %619 = vmatmul.mubr.bf16.vlgmr.msra.gmra.mrb[0].mxu1 %v1356_v10  ;;  %v1382_v8 = vshrl.u32 %v129_v7, 7 }
  0x5c   :  { %660 = vmatpush1.bf16.msra.mxu0 %v1055_v13  ;;  %733 = vmatpush1.bf16.msra.mxu1 %v1057_v14 }
  0x5d   :  { %661 = vmatprep.subr.bf16.mxu0 %v1064_v15  ;;  %734 = vmatprep.subr.bf16.mxu1 %v1066_v16  ;;  %v131_v9 = vsub.s32 0, %v1382_v8  ;;  %v139_v11 = vsub.s32 2, %v1382_v8  ;;  %v135_v12 = vsub.s32 1, %v1382_v8  ;;  %v143_v13 = vsub.s32 3, %v1382_v8 }
  0x5e   :  { %555 = vmatprep.mubr.bf16.mxu0 %v1293_v0  ;;  %628 = vmatprep.mubr.bf16.mxu1 %v1293_v0 }
  0x60   :  { %662 = vmatpush1.bf16.msra.mxu0 %v1063_v21  ;;  %735 = vmatpush1.bf16.msra.mxu1 %v1065_v22 }
  0x61   :  { %663 = vmatprep.subr.bf16.mxu0 %v1072_v23  ;;  %736 = vmatprep.subr.bf16.mxu1 %v1074_v24 }
  0x63   :  { %556 = vmatmul.mubr.bf16.gmra.mrb[4].mxu0 %v1362_v27  ;;  %629 = vmatmul.mubr.bf16.gmra.mrb[4].mxu1 %v1362_v27 }
  0x64   :  { %664 = vmatpush1.bf16.msra.mxu0 %v1071_v30  ;;  %737 = vmatpush1.bf16.msra.mxu1 %v1073_v31 }
  0x65   :  { %665 = vmatprep.subr.bf16.mxu0 %v1080_v32  ;;  %738 = vmatprep.subr.bf16.mxu1 %v1082_v33 }
  0x66   :  { %565 = vmatprep.mubr.bf16.mxu0 %v1293_v0  ;;  %638 = vmatprep.mubr.bf16.mxu1 %v1293_v0 }
  0x68   :  { %666 = vmatpush1.bf16.msra.mxu0 %v1079_v38  ;;  %739 = vmatpush1.bf16.msra.mxu1 %v1081_v39 }
  0x69   :  { %667 = vmatprep.subr.bf16.mxu0 %v1088_v40  ;;  %740 = vmatprep.subr.bf16.mxu1 %v1090_v41 }
  0x6b   :  { %566 = vmatmul.mubr.bf16.gmra.mrb[8].mxu0 %v1190_v44  ;;  %639 = vmatmul.mubr.bf16.gmra.mrb[8].mxu1 %v1190_v44 }
  0x6c   :  { %668 = vmatpush1.bf16.msra.mxu0 %v1087_v47  ;;  %741 = vmatpush1.bf16.msra.mxu1 %v1089_v48 }
  0x6d   :  { %669 = vmatprep.subr.bf16.mxu0 %v1096_v49  ;;  %742 = vmatprep.subr.bf16.mxu1 %v1098_v50 }
  0x6e   :  { %575 = vmatprep.mubr.bf16.mxu0 %v1293_v0  ;;  %648 = vmatprep.mubr.bf16.mxu1 %v1293_v0 }
  0x70   :  { %670 = vmatpush1.bf16.msra.mxu0 %v1095_v55  ;;  %743 = vmatpush1.bf16.msra.mxu1 %v1097_v56 }
  0x71   :  { %671 = vmatprep.subr.bf16.mxu0 %v1104_v57  ;;  %744 = vmatprep.subr.bf16.mxu1 %v1106_v58 }
  0x73   :  { %576 = vmatmul.mubr.bf16.gmra.mrb[12].mxu0 %v1191_v61  ;;  %649 = vmatmul.mubr.bf16.gmra.mrb[12].mxu1 %v1191_v61 }
  0x74   :  { %672 = vmatpush1.bf16.msra.mxu0 %v1103_v1  ;;  %745 = vmatpush1.bf16.msra.mxu1 %v1105_v2 }
  0x75   :  { %673 = vmatprep.subr.bf16.mxu0 %v1112_v3  ;;  %746 = vmatprep.subr.bf16.mxu1 %v1114_v4 }
  0x76   :  { %691 = vmatprep.mubr.bf16.mxu0 %v1293_v0  ;;  %764 = vmatprep.mubr.bf16.mxu1 %v1293_v0 }
  0x78   :  { %674 = vmatpush1.bf16.msra.mxu0 %v1111_v5  ;;  %747 = vmatpush1.bf16.msra.mxu1 %v1113_v6 }
  0x7b   :  { %692 = vmatmul.mubr.bf16.vlgmr.msra.gmra.mrb[16].mxu0 %v1356_v10  ;;  %765 = vmatmul.mubr.bf16.vlgmr.msra.gmra.mrb[16].mxu1 %v1356_v10  ;;  %v1385_v10 = vld [vmem:[#allocation7] sm:$0xff] }
  0x7c   :  { %701 = vmatprep.mubr.bf16.mxu0 %v1293_v0  ;;  %774 = vmatprep.mubr.bf16.mxu1 %v1293_v0  ;;  %v1391_v14 = vrot.slane %v1385_v10, %v131_v9  ;;  %v1397_v15 = vrot.slane %v1385_v10, %v135_v12  ;;  %v1400_v16 = vrot.slane %v1385_v10, %v143_v13 }
  0x83   :  { %702 = vmatmul.mubr.bf16.gmra.mrb[20].mxu0 %v1362_v27  ;;  %775 = vmatmul.mubr.bf16.gmra.mrb[20].mxu1 %v1362_v27 }
  0x84   :  { %711 = vmatprep.mubr.bf16.mxu0 %v1293_v0  ;;  %784 = vmatprep.mubr.bf16.mxu1 %v1293_v0 }
  0x8b   :  { %712 = vmatmul.mubr.bf16.gmra.mrb[24].mxu0 %v1190_v44  ;;  %785 = vmatmul.mubr.bf16.gmra.mrb[24].mxu1 %v1190_v44 }
  0x8c   :  { %721 = vmatprep.mubr.bf16.mxu0 %v1293_v0  ;;  %794 = vmatprep.mubr.bf16.mxu1 %v1293_v0  ;;  %v1394_v0 = vrot.slane %v1385_v10, %v139_v11 }
  0x93   :  { %722 = vmatmul.mubr.bf16.gmra.mrb[28].mxu0 %v1191_v61  ;;  %795 = vmatmul.mubr.bf16.gmra.mrb[28].mxu1 %v1191_v61 }
 0x12e   :  { %v547_v17 = vpop.f32.mrb[0].mxu0  ;;  %v620_v19 = vpop.f32.mrb[0].mxu1 }
 0x12f   :  { %v548_v18 = vadd.f32 %v547_v17, %v1391_v14  ;;  %v549_v20 = vpop.f32.mrb[1].mxu0  ;;  %v621_v21 = vadd.f32 %v620_v19, %v1394_v0  ;;  %v622_v23 = vpop.f32.mrb[1].mxu1 }
 0x130   :  { %v550_v22 = vadd.f32 %v549_v20, %v1397_v15  ;;  %v551_v24 = vpop.f32.mrb[2].mxu0  ;;  %v623_v25 = vadd.f32 %v622_v23, %v1400_v16  ;;  %v624_v27 = vpop.f32.mrb[2].mxu1  ;;  %v147_v23 = vsub.s32 4, %v1382_v8 }
 0x131   :  { %v552_v26 = vadd.f32 %v551_v24, %v1391_v14  ;;  %v553_v28 = vpop.f32.mrb[3].mxu0  ;;  %v625_v30 = vadd.f32 %v624_v27, %v1394_v0  ;;  %v626_v32 = vpop.f32.mrb[3].mxu1 }
 0x132   :  { %v1147_v29 = vpack.c.bf16 %v550_v22, %v548_v18  ;;  %v554_v31 = vadd.f32 %v553_v28, %v1397_v15  ;;  %v1148_v33 = vpack.c.bf16 %v623_v25, %v621_v21  ;;  %v627_v34 = vadd.f32 %v626_v32, %v1400_v16 }
 0x133   :  { %v155_v28 = vsub.s32 6, %v1382_v8 }
 0x134   :  { %997 = vst [vmem:[#allocation8] sm:$0xff] %v1147_v29  ;;  %v1151_v35 = vpack.c.bf16 %v554_v31, %v552_v26  ;;  %998 = vst [vmem:[#allocation8 + $0x8] sm:$0xff] %v1148_v33  ;;  %v1152_v36 = vpack.c.bf16 %v627_v34, %v625_v30  ;;  %v151_v29 = vsub.s32 5, %v1382_v8  ;;  %v159_v34 = vsub.s32 7, %v1382_v8 }
 0x136   :  { %1001 = vst [vmem:[#allocation8 + $0x20] sm:$0xff] %v1151_v35  ;;  %v557_v37 = vpop.f32.mrb[4].mxu0  ;;  %1002 = vst [vmem:[#allocation8 + $0x28] sm:$0xff] %v1152_v36  ;;  %v630_v39 = vpop.f32.mrb[4].mxu1 }
 0x137   :  { %v558_v38 = vadd.f32 %v557_v37, %v1391_v14  ;;  %v559_v40 = vpop.f32.mrb[5].mxu0  ;;  %v631_v41 = vadd.f32 %v630_v39, %v1394_v0  ;;  %v632_v43 = vpop.f32.mrb[5].mxu1 }
 0x138   :  { %v560_v42 = vadd.f32 %v559_v40, %v1397_v15  ;;  %v561_v44 = vpop.f32.mrb[6].mxu0  ;;  %v633_v45 = vadd.f32 %v632_v43, %v1400_v16  ;;  %v634_v47 = vpop.f32.mrb[6].mxu1  ;;  %v1445_v43 = vrot.slane %v1385_v10, %v151_v29 }
 0x139   :  { %v562_v46 = vadd.f32 %v561_v44, %v1391_v14  ;;  %v563_v48 = vpop.f32.mrb[7].mxu0  ;;  %v635_v50 = vadd.f32 %v634_v47, %v1394_v0  ;;  %v636_v52 = vpop.f32.mrb[7].mxu1 }
 0x13a   :  { %v1155_v49 = vpack.c.bf16 %v560_v42, %v558_v38  ;;  %v564_v51 = vadd.f32 %v563_v48, %v1397_v15  ;;  %v1156_v53 = vpack.c.bf16 %v633_v45, %v631_v41  ;;  %v637_v54 = vadd.f32 %v636_v52, %v1400_v16 }
 0x13b   :  { %v1439_v41 = vrot.slane %v1385_v10, %v147_v23 }
 0x13c   :  { %1005 = vst [vmem:[#allocation8 + $0x40] sm:$0xff] %v1155_v49  ;;  %v1159_v55 = vpack.c.bf16 %v564_v51, %v562_v46  ;;  %1006 = vst [vmem:[#allocation8 + $0x48] sm:$0xff] %v1156_v53  ;;  %v1160_v56 = vpack.c.bf16 %v637_v54, %v635_v50 }
 0x13e   :  { %1009 = vst [vmem:[#allocation8 + $0x60] sm:$0xff] %v1159_v55  ;;  %v567_v57 = vpop.f32.mrb[8].mxu0  ;;  %1010 = vst [vmem:[#allocation8 + $0x68] sm:$0xff] %v1160_v56  ;;  %v640_v59 = vpop.f32.mrb[8].mxu1 }
 0x13f   :  { %v568_v58 = vadd.f32 %v567_v57, %v1391_v14  ;;  %v569_v60 = vpop.f32.mrb[9].mxu0  ;;  %v641_v61 = vadd.f32 %v640_v59, %v1394_v0  ;;  %v642_v63 = vpop.f32.mrb[9].mxu1 }
 0x140   :  { %v570_v62 = vadd.f32 %v569_v60, %v1397_v15  ;;  %v571_v1 = vpop.f32.mrb[10].mxu0  ;;  %v643_v2 = vadd.f32 %v642_v63, %v1400_v16  ;;  %v644_v4 = vpop.f32.mrb[10].mxu1 }
 0x141   :  { %v572_v3 = vadd.f32 %v571_v1, %v1391_v14  ;;  %v573_v5 = vpop.f32.mrb[11].mxu0  ;;  %v645_v7 = vadd.f32 %v644_v4, %v1394_v0  ;;  %v646_v11 = vpop.f32.mrb[11].mxu1 }
 0x142   :  { %v1163_v6 = vpack.c.bf16 %v570_v62, %v568_v58  ;;  %v574_v9 = vadd.f32 %v573_v5, %v1397_v15  ;;  %v1164_v12 = vpack.c.bf16 %v643_v2, %v641_v61  ;;  %v647_v13 = vadd.f32 %v646_v11, %v1400_v16 }
 0x144   :  { %1013 = vst [vmem:[#allocation8 + $0x80] sm:$0xff] %v1163_v6  ;;  %v1167_v17 = vpack.c.bf16 %v574_v9, %v572_v3  ;;  %1014 = vst [vmem:[#allocation8 + $0x88] sm:$0xff] %v1164_v12  ;;  %v1168_v18 = vpack.c.bf16 %v647_v13, %v645_v7 }
 0x146   :  { %1017 = vst [vmem:[#allocation8 + $0xa0] sm:$0xff] %v1167_v17  ;;  %v577_v19 = vpop.f32.mrb[12].mxu0  ;;  %1018 = vst [vmem:[#allocation8 + $0xa8] sm:$0xff] %v1168_v18  ;;  %v650_v21 = vpop.f32.mrb[12].mxu1 }
 0x147   :  { %v578_v20 = vadd.f32 %v577_v19, %v1391_v14  ;;  %v579_v22 = vpop.f32.mrb[13].mxu0  ;;  %v651_v24 = vadd.f32 %v650_v21, %v1394_v0  ;;  %v652_v26 = vpop.f32.mrb[13].mxu1 }
 0x148   :  { %v580_v25 = vadd.f32 %v579_v22, %v1397_v15  ;;  %v581_v27 = vpop.f32.mrb[14].mxu0  ;;  %v653_v30 = vadd.f32 %v652_v26, %v1400_v16  ;;  %v654_v32 = vpop.f32.mrb[14].mxu1 }
 0x149   :  { %v582_v31 = vadd.f32 %v581_v27, %v1391_v14  ;;  %v583_v33 = vpop.f32.mrb[15].mxu0  ;;  %v655_v36 = vadd.f32 %v654_v32, %v1394_v0  ;;  %v656_v38 = vpop.f32.mrb[15].mxu1  ;;  %v1442_v14 = vrot.slane %v1385_v10, %v155_v28  ;;  %v1448_v0 = vrot.slane %v1385_v10, %v159_v34 }
 0x14a   :  { %v1171_v35 = vpack.c.bf16 %v580_v25, %v578_v20  ;;  %v584_v37 = vadd.f32 %v583_v33, %v1397_v15  ;;  %v1172_v39 = vpack.c.bf16 %v653_v30, %v651_v24  ;;  %v657_v40 = vadd.f32 %v656_v38, %v1400_v16 }
 0x14c   :  { %1021 = vst [vmem:[#allocation8 + $0xc0] sm:$0xff] %v1171_v35  ;;  %v1175_v42 = vpack.c.bf16 %v584_v37, %v582_v31  ;;  %1022 = vst [vmem:[#allocation8 + $0xc8] sm:$0xff] %v1172_v39  ;;  %v1176_v8 = vpack.c.bf16 %v657_v40, %v655_v36 }
 0x14e   :  { %1025 = vst [vmem:[#allocation8 + $0xe0] sm:$0xff] %v1175_v42  ;;  %v693_v15 = vpop.f32.mrb[16].mxu0  ;;  %1026 = vst [vmem:[#allocation8 + $0xe8] sm:$0xff] %v1176_v8  ;;  %v766_v44 = vpop.f32.mrb[16].mxu1 }
 0x14f   :  { %v694_v16 = vadd.f32 %v693_v15, %v1439_v41  ;;  %v695_v45 = vpop.f32.mrb[17].mxu0  ;;  %v767_v46 = vadd.f32 %v766_v44, %v1442_v14  ;;  %v768_v48 = vpop.f32.mrb[17].mxu1 }
 0x150   :  { %v696_v47 = vadd.f32 %v695_v45, %v1445_v43  ;;  %v697_v49 = vpop.f32.mrb[18].mxu0  ;;  %v769_v50 = vadd.f32 %v768_v48, %v1448_v0  ;;  %v770_v52 = vpop.f32.mrb[18].mxu1 }
 0x151   :  { %v698_v51 = vadd.f32 %v697_v49, %v1439_v41  ;;  %v699_v10 = vpop.f32.mrb[19].mxu0  ;;  %v771_v54 = vadd.f32 %v770_v52, %v1442_v14  ;;  %v772_v56 = vpop.f32.mrb[19].mxu1 }
 0x152   :  { %v1149_v53 = vpack.c.bf16 %v696_v47, %v694_v16  ;;  %v700_v55 = vadd.f32 %v699_v10, %v1445_v43  ;;  %v1150_v57 = vpack.c.bf16 %v769_v50, %v767_v46  ;;  %v773_v58 = vadd.f32 %v772_v56, %v1448_v0 }
 0x154   :  { %999 = vst [vmem:[#allocation8 + $0x10] sm:$0xff] %v1149_v53  ;;  %v1153_v59 = vpack.c.bf16 %v700_v55, %v698_v51  ;;  %1000 = vst [vmem:[#allocation8 + $0x18] sm:$0xff] %v1150_v57  ;;  %v1154_v60 = vpack.c.bf16 %v773_v58, %v771_v54 }
 0x156   :  { %1003 = vst [vmem:[#allocation8 + $0x30] sm:$0xff] %v1153_v59  ;;  %v703_v61 = vpop.f32.mrb[20].mxu0  ;;  %1004 = vst [vmem:[#allocation8 + $0x38] sm:$0xff] %v1154_v60  ;;  %v776_v63 = vpop.f32.mrb[20].mxu1 }
 0x157   :  { %v704_v62 = vadd.f32 %v703_v61, %v1439_v41  ;;  %v705_v1 = vpop.f32.mrb[21].mxu0  ;;  %v777_v2 = vadd.f32 %v776_v63, %v1442_v14  ;;  %v778_v4 = vpop.f32.mrb[21].mxu1 }
 0x158   :  { %v706_v3 = vadd.f32 %v705_v1, %v1445_v43  ;;  %v707_v5 = vpop.f32.mrb[22].mxu0  ;;  %v779_v6 = vadd.f32 %v778_v4, %v1448_v0  ;;  %v780_v9 = vpop.f32.mrb[22].mxu1 }
 0x159   :  { %v708_v7 = vadd.f32 %v707_v5, %v1439_v41  ;;  %v709_v11 = vpop.f32.mrb[23].mxu0  ;;  %v781_v13 = vadd.f32 %v780_v9, %v1442_v14  ;;  %v782_v18 = vpop.f32.mrb[23].mxu1 }
 0x15a   :  { %v1157_v12 = vpack.c.bf16 %v706_v3, %v704_v62  ;;  %v710_v17 = vadd.f32 %v709_v11, %v1445_v43  ;;  %v1158_v19 = vpack.c.bf16 %v779_v6, %v777_v2  ;;  %v783_v20 = vadd.f32 %v782_v18, %v1448_v0 }
 0x15c   :  { %1007 = vst [vmem:[#allocation8 + $0x50] sm:$0xff] %v1157_v12  ;;  %v1161_v21 = vpack.c.bf16 %v710_v17, %v708_v7  ;;  %1008 = vst [vmem:[#allocation8 + $0x58] sm:$0xff] %v1158_v19  ;;  %v1162_v22 = vpack.c.bf16 %v783_v20, %v781_v13 }
 0x15e   :  { %1011 = vst [vmem:[#allocation8 + $0x70] sm:$0xff] %v1161_v21  ;;  %v713_v23 = vpop.f32.mrb[24].mxu0  ;;  %1012 = vst [vmem:[#allocation8 + $0x78] sm:$0xff] %v1162_v22  ;;  %v786_v25 = vpop.f32.mrb[24].mxu1 }
 0x15f   :  { %v714_v24 = vadd.f32 %v713_v23, %v1439_v41  ;;  %v715_v26 = vpop.f32.mrb[25].mxu0  ;;  %v787_v27 = vadd.f32 %v786_v25, %v1442_v14  ;;  %v788_v29 = vpop.f32.mrb[25].mxu1 }
 0x160   :  { %v716_v28 = vadd.f32 %v715_v26, %v1445_v43  ;;  %v717_v30 = vpop.f32.mrb[26].mxu0  ;;  %v789_v31 = vadd.f32 %v788_v29, %v1448_v0  ;;  %v790_v33 = vpop.f32.mrb[26].mxu1 }
 0x161   :  { %v718_v32 = vadd.f32 %v717_v30, %v1439_v41  ;;  %v719_v34 = vpop.f32.mrb[27].mxu0  ;;  %v791_v36 = vadd.f32 %v790_v33, %v1442_v14  ;;  %v792_v38 = vpop.f32.mrb[27].mxu1 }
 0x162   :  { %v1165_v35 = vpack.c.bf16 %v716_v28, %v714_v24  ;;  %v720_v37 = vadd.f32 %v719_v34, %v1445_v43  ;;  %v1166_v39 = vpack.c.bf16 %v789_v31, %v787_v27  ;;  %v793_v40 = vadd.f32 %v792_v38, %v1448_v0 }
 0x164   :  { %1015 = vst [vmem:[#allocation8 + $0x90] sm:$0xff] %v1165_v35  ;;  %v1169_v42 = vpack.c.bf16 %v720_v37, %v718_v32  ;;  %1016 = vst [vmem:[#allocation8 + $0x98] sm:$0xff] %v1166_v39  ;;  %v1170_v8 = vpack.c.bf16 %v793_v40, %v791_v36 }
 0x166   :  { %1019 = vst [vmem:[#allocation8 + $0xb0] sm:$0xff] %v1169_v42  ;;  %v723_v15 = vpop.f32.mrb[28].mxu0  ;;  %1020 = vst [vmem:[#allocation8 + $0xb8] sm:$0xff] %v1170_v8  ;;  %v796_v44 = vpop.f32.mrb[28].mxu1 }
 0x167   :  { %v724_v16 = vadd.f32 %v723_v15, %v1439_v41  ;;  %v725_v45 = vpop.f32.mrb[29].mxu0  ;;  %v797_v46 = vadd.f32 %v796_v44, %v1442_v14  ;;  %v798_v48 = vpop.f32.mrb[29].mxu1 }
 0x168   :  { %v726_v47 = vadd.f32 %v725_v45, %v1445_v43  ;;  %v727_v49 = vpop.f32.mrb[30].mxu0  ;;  %v799_v50 = vadd.f32 %v798_v48, %v1448_v0  ;;  %v800_v52 = vpop.f32.mrb[30].mxu1 }
 0x169   :  { %v728_v51 = vadd.f32 %v727_v49, %v1439_v41  ;;  %v729_v10 = vpop.f32.mrb[31].mxu0  ;;  %v801_v54 = vadd.f32 %v800_v52, %v1442_v14  ;;  %v802_v56 = vpop.f32.mrb[31].mxu1 }
 0x16a   :  { %v1173_v53 = vpack.c.bf16 %v726_v47, %v724_v16  ;;  %v730_v55 = vadd.f32 %v729_v10, %v1445_v43  ;;  %v1174_v57 = vpack.c.bf16 %v799_v50, %v797_v46  ;;  %v803_v58 = vadd.f32 %v802_v56, %v1448_v0 }
 0x16c   :  { %1023 = vst [vmem:[#allocation8 + $0xd0] sm:$0xff] %v1173_v53  ;;  %v1177_v59 = vpack.c.bf16 %v730_v55, %v728_v51  ;;  %1024 = vst [vmem:[#allocation8 + $0xd8] sm:$0xff] %v1174_v57  ;;  %v1178_v60 = vpack.c.bf16 %v803_v58, %v801_v54 }
 0x16e   :  { %1027 = vst [vmem:[#allocation8 + $0xf0] sm:$0xff] %v1177_v59  ;;  %1028 = vst [vmem:[#allocation8 + $0xf8] sm:$0xff] %v1178_v60 }
 0x16f   :  { %1269 = shalt.err (!%p1266_p0)
}
 0x170   :  { %s1270_s29 = scalar_lea.hbm %s1500_s3, 4096 }
 0x171   :  { %p1271_p1 = scmp.ne.s32.totalorder %s1500_s3, %s1270_s29  ;;  %p1274_p2 = scmp.lt.u32.totalorder %s1270_s29, %s1500_s3 }
 0x173   :  { %p1276_p3 = pnand %p1274_p2, %p1271_p1 }
 0x175   :  { %1279 = shalt.err (!%p1276_p3)
}
 0x176   :  { %1040 = dma.vmem_to_hbm [thread:$0]  %s1035_s25, 4096, %s1500_s3, [#allocation4], %s1287_s22, %s1287_s22, %s1288_s23  }
 0x177   :  { %1284 = dma.done.wait [#allocation4], 4096  }
 0x178   :  { %1285 = vsyncadd [#allocation4], 4294963200 }
 0x179   :  { %1044 = vsyncpa [#allocation3], 1 }
 0x17a   :  { %1045 = vsyncpa [#allocation6], 1 }
 0x17b   :  { %1046 = vsyncpa [#allocation4], 1 }

</bundles_post_ra>
